<compile_context>
chip_gen: v7x
topology: tpu7x:2x2x1
jax: 0.10.0
libtpu: 0.0.40
codegen_flags: <defaults>
</compile_context>

<pallas_src>
import math

import jax
import jax.numpy as jnp
from jax.experimental import pallas as pl
from jax.experimental.pallas import tpu as pltpu


def _make_kernel(kH, kW, Th, Wo, Cin, Cout):
    def kernel(x_ref, w_ref, b_ref, o_ref):
        # x_ref: (1, Hp, Wp, Cin)   full padded NHWC image of one batch element
        # w_ref: (kH*kW*Cin, Cout)  equal-lr scaled weight, (kh, kw, ci) flattened
        # b_ref: (1, Cout)          f32 bias
        # o_ref: (1, Th*Wo, Cout)   f32 output band (output rows [hb*Th, hb*Th+Th))
        hb = pl.program_id(1)
        row0 = pl.multiple_of(hb * Th, Th)

        # Load the (Th + kH - 1) padded input rows this band needs, once.
        band = x_ref[0, pl.ds(row0, Th + kH - 1), :, :]      # (Th+kH-1, Wp, Cin)

        # im2col: gather the kH*kW taps and fold them into the contraction dim.
        cols = [band[kh:kh + Th, kw:kw + Wo, :]              # (Th, Wo, Cin)
                for kh in range(kH) for kw in range(kW)]
        patch = jnp.concatenate(cols, axis=-1)               # (Th, Wo, kH*kW*Cin)
        patch = patch.reshape(Th * Wo, kH * kW * Cin)

        # One MXU matmul per band; accumulate in f32.
        acc = jnp.dot(patch, w_ref[...], preferred_element_type=jnp.float32)
        acc = acc + b_ref[...]                               # (Th*Wo, Cout)
        o_ref[...] = acc[None].astype(o_ref.dtype)

    return kernel


def equal_conv2d(x, weight, bias, stride=1, padding=0,
                 compute_dtype=jnp.bfloat16):
    """Forward of EqualConv2d (equal-lr scaled nn.Conv2d).

    x:      (N, Cin, H, W)       NCHW, like PyTorch
    weight: (Cout, Cin, kH, kW)  raw Conv2d weight (normal-init)
    bias:   (Cout,)
    Returns (N, Cout, Ho, Wo), Ho = H + 2*padding - kH + 1 (stride 1).
    """
    N, Cin, H, W = x.shape
    Cout, Cin_w, kH, kW = weight.shape
    assert Cin == Cin_w
    # TODO(synk): stride > 1 / dilation / groups of nn.Conv2d not implemented here.
    assert stride == 1, "only stride=1 is implemented in the Pallas path"

    # EqualLR: fan_in = weight.size(1) * weight[0][0].numel() = Cin * kH * kW
    fan_in = Cin * kH * kW
    scale = math.sqrt(2.0 / fan_in)

    # (Cout, Cin, kH, kW) -> (kH, kW, Cin, Cout) -> (kH*kW*Cin, Cout), bf16 operands.
    w_mat = jnp.transpose(weight * scale, (2, 3, 1, 0)).reshape(
        kH * kW * Cin, Cout).astype(compute_dtype)
    b2 = bias.reshape(1, Cout).astype(jnp.float32)

    # NCHW -> NHWC, pad spatially, cast matmul operand to bf16 (f32 accumulation).
    x_nhwc = jnp.transpose(x, (0, 2, 3, 1)).astype(compute_dtype)
    xp = jnp.pad(x_nhwc, ((0, 0), (padding, padding), (padding, padding), (0, 0)))
    Hp, Wp = H + 2 * padding, W + 2 * padding
    Ho, Wo = Hp - kH + 1, Wp - kW + 1

    # Band of Th output rows per grid step (amortizes per-step overhead; keeps
    # the live accumulator small). Th multiple of 8, or full Ho as fallback.
    Th = Ho
    for cand in (8, 16, 32):
        if Ho % cand == 0:
            Th = cand
            break
    n_bands = Ho // Th

    # Explicit VMEM budget (double-buffered inputs/outputs + temporaries).
    # TODO(synk): for large Hp*Wp*Cin, tile H into overlapping row bands
    # (memory_space=pl.ANY + manual make_async_copy) instead of keeping the
    # whole padded image VMEM-resident; also tile Wo/Cout for large channels.
    itemsize = jnp.dtype(compute_dtype).itemsize
    vmem_est = (2 * Hp * Wp * Cin * itemsize          # double-buffered input image
                + kH * kW * Cin * Cout * itemsize     # weight (resident)
                + 2 * Th * Wo * Cout * 4              # double-buffered output band
                + Th * Wo * kH * kW * Cin * itemsize  # im2col patch temporary
                + (2 << 20))                          # slack
    vmem_limit = int(min(max(2 * vmem_est, 16 << 20), 48 << 20))

    kernel = _make_kernel(kH, kW, Th, Wo, Cin, Cout)
    out_flat = pl.pallas_call(
        kernel,
        out_shape=jax.ShapeDtypeStruct((N, Ho * Wo, Cout), jnp.float32),
        grid_spec=pltpu.PrefetchScalarGridSpec(
            num_scalar_prefetch=0,
            grid=(N, n_bands),
            in_specs=[
                # Full padded image of batch element n, resident across bands.
                pl.BlockSpec((1, Hp, Wp, Cin), lambda n, hb: (n, 0, 0, 0)),
                pl.BlockSpec((kH * kW * Cin, Cout), lambda n, hb: (0, 0)),
                pl.BlockSpec((1, Cout), lambda n, hb: (0, 0)),
            ],
            out_specs=pl.BlockSpec((1, Th * Wo, Cout), lambda n, hb: (n, hb, 0)),
        ),
        compiler_params=pltpu.CompilerParams(
            # No cross-step accumulator anywhere: both axes are legal parallel
            # axes (v7x can shard either across its two TensorCores).
            dimension_semantics=("parallel", "parallel"),
            vmem_limit_bytes=vmem_limit),
    )(xp, w_mat, b2)

    out = out_flat.reshape(N, Ho, Wo, Cout)
    return jnp.transpose(out, (0, 3, 1, 2)).astype(x.dtype)


if __name__ == "__main__":
    key = jax.random.PRNGKey(0)
    N, Cin, H, W = 2, 4, 16, 16
    Cout, k, padding = 8, 3, 1

    kx, kw = jax.random.split(key)
    x = jax.random.normal(kx, (N, Cin, H, W), jnp.float32)
    # conv.weight.data.normal_(), conv.bias.data.zero_()
    weight = jax.random.normal(kw, (Cout, Cin, k, k), jnp.float32)
    bias = jnp.zeros((Cout,), jnp.float32)

    out = jax.block_until_ready(equal_conv2d(x, weight, bias, padding=padding))

    # Reference: XLA conv with the same equal-lr scaling and the same
    # bf16-operand / f32-accumulation precision as the kernel.
    scale = math.sqrt(2.0 / (Cin * k * k))
    ref = jax.lax.conv_general_dilated(
        x.astype(jnp.bfloat16), (weight * scale).astype(jnp.bfloat16),
        window_strides=(1, 1), padding=[(padding, padding)] * 2,
        dimension_numbers=('NCHW', 'OIHW', 'NCHW'),
        preferred_element_type=jnp.float32) + bias.reshape(1, Cout, 1, 1)

    Ho = H + 2 * padding - k + 1
    assert out.shape == (N, Cout, Ho, Ho), out.shape
    err = float(jnp.abs(out - ref).max())
    assert jnp.allclose(out, ref, atol=1e-2, rtol=1e-2), err
    print("KERNEL_OK")
</pallas_src>

<mosaic_0001>
module attributes {stable_mosaic.version = 11 : i64} {
  func.func @kernel(%arg0: i32, %arg1: i32, %arg2: memref<1x18x18x4xbf16, #tpu.memory_space<vmem>>, %arg3: memref<36x8xbf16, #tpu.memory_space<vmem>>, %arg4: memref<1x8xf32, #tpu.memory_space<vmem>>, %arg5: memref<1x128x8xf32, #tpu.memory_space<vmem>>) attributes {dimension_semantics = [#tpu.dimension_semantics<parallel>, #tpu.dimension_semantics<parallel>], iteration_bounds = array<i64: 2, 2>, scalar_prefetch = 0 : i64, scratch_operands = 0 : i64, tpu.core_type = #tpu.core_type<tc>, window_params = [{transform_indices = @transform_0, window_bounds = array<i64: 1, 18, 18, 4>}, {pipeline_mode = #tpu.pipeline_mode<synchronous>, transform_indices = @transform_1, window_bounds = array<i64: 36, 8>}, {pipeline_mode = #tpu.pipeline_mode<synchronous>, transform_indices = @transform_2, window_bounds = array<i64: 1, 8>}, {transform_indices = @transform_3, window_bounds = array<i64: 1, 128, 8>}]} {
    %c8_i32 = arith.constant 8 : i32
    %0 = arith.muli %arg1, %c8_i32 : i32
    %1 = tpu.assume_multiple %0, 8 : i32
    %c0 = arith.constant 0 : index
    %2 = arith.index_cast %1 : i32 to index
    %c0_0 = arith.constant 0 : index
    %c0_1 = arith.constant 0 : index
    %3 = vector.load %arg2[%c0, %2, %c0_0, %c0_1] : memref<1x18x18x4xbf16, #tpu.memory_space<vmem>>, vector<1x10x18x4xbf16>
    %4 = vector.shape_cast %3 : vector<1x10x18x4xbf16> to vector<10x18x4xbf16>
    %5 = vector.extract_strided_slice %4 {offsets = [0, 0, 0], sizes = [8, 16, 4], strides = [1, 1, 1]} : vector<10x18x4xbf16> to vector<8x16x4xbf16>
    %6 = vector.extract_strided_slice %4 {offsets = [0, 1, 0], sizes = [8, 16, 4], strides = [1, 1, 1]} : vector<10x18x4xbf16> to vector<8x16x4xbf16>
    %7 = vector.extract_strided_slice %4 {offsets = [0, 2, 0], sizes = [8, 16, 4], strides = [1, 1, 1]} : vector<10x18x4xbf16> to vector<8x16x4xbf16>
    %8 = vector.extract_strided_slice %4 {offsets = [1, 0, 0], sizes = [8, 16, 4], strides = [1, 1, 1]} : vector<10x18x4xbf16> to vector<8x16x4xbf16>
    %9 = vector.extract_strided_slice %4 {offsets = [1, 1, 0], sizes = [8, 16, 4], strides = [1, 1, 1]} : vector<10x18x4xbf16> to vector<8x16x4xbf16>
    %10 = vector.extract_strided_slice %4 {offsets = [1, 2, 0], sizes = [8, 16, 4], strides = [1, 1, 1]} : vector<10x18x4xbf16> to vector<8x16x4xbf16>
    %11 = vector.extract_strided_slice %4 {offsets = [2, 0, 0], sizes = [8, 16, 4], strides = [1, 1, 1]} : vector<10x18x4xbf16> to vector<8x16x4xbf16>
    %12 = vector.extract_strided_slice %4 {offsets = [2, 1, 0], sizes = [8, 16, 4], strides = [1, 1, 1]} : vector<10x18x4xbf16> to vector<8x16x4xbf16>
    %13 = vector.extract_strided_slice %4 {offsets = [2, 2, 0], sizes = [8, 16, 4], strides = [1, 1, 1]} : vector<10x18x4xbf16> to vector<8x16x4xbf16>
    %14 = tpu.concatenate %5, %6, %7, %8, %9, %10, %11, %12, %13 in 2 : vector<8x16x4xbf16>, vector<8x16x4xbf16>, vector<8x16x4xbf16>, vector<8x16x4xbf16>, vector<8x16x4xbf16>, vector<8x16x4xbf16>, vector<8x16x4xbf16>, vector<8x16x4xbf16>, vector<8x16x4xbf16> -> vector<8x16x36xbf16>
    %15 = vector.shape_cast %14 : vector<8x16x36xbf16> to vector<128x36xbf16>
    %c0_2 = arith.constant 0 : index
    %c0_3 = arith.constant 0 : index
    %16 = vector.load %arg3[%c0_2, %c0_3] : memref<36x8xbf16, #tpu.memory_space<vmem>>, vector<36x8xbf16>
    %cst = arith.constant dense<0.000000e+00> : vector<128x8xf32>
    %17 = tpu.matmul %15, %16, %cst {dimension_numbers = #tpu.dot_dimension_numbers<[1], [0], [0], [1], [0, 0, 1, 1], [], []>} : vector<128x36xbf16>, vector<36x8xbf16>, vector<128x8xf32> -> vector<128x8xf32>
    %c0_4 = arith.constant 0 : index
    %c0_5 = arith.constant 0 : index
    %18 = vector.load %arg4[%c0_4, %c0_5] : memref<1x8xf32, #tpu.memory_space<vmem>>, vector<1x8xf32>
    %19 = vector.broadcast %18 : vector<1x8xf32> to vector<128x8xf32>
    %20 = arith.addf %17, %19 : vector<128x8xf32>
    %21 = vector.shape_cast %20 : vector<128x8xf32> to vector<1x128x8xf32>
    %c0_6 = arith.constant 0 : index
    %c0_7 = arith.constant 0 : index
    %c0_8 = arith.constant 0 : index
    %22 = vector.load %arg5[%c0_6, %c0_7, %c0_8] : memref<1x128x8xf32, #tpu.memory_space<vmem>>, vector<1x128x8xf32>
    tpu.vector_store %arg5[%c0_6, %c0_7, %c0_8], %21 {strides = array<i32>} : memref<1x128x8xf32, #tpu.memory_space<vmem>>, vector<1x128x8xf32>,
    return
  }
  func.func @transform_0(%arg0: i32, %arg1: i32) -> (i32, i32, i32, i32) {
    %c0_i32 = arith.constant 0 : i32
    %c0_i32_0 = arith.constant 0 : i32
    %c0_i32_1 = arith.constant 0 : i32
    %c0_i32_2 = arith.constant 0 : i32
    return %arg0, %c0_i32, %c0_i32_0, %c0_i32_1 : i32, i32, i32, i32
  }
  func.func @transform_1(%arg0: i32, %arg1: i32) -> (i32, i32) {
    %c0_i32 = arith.constant 0 : i32
    %c0_i32_0 = arith.constant 0 : i32
    %c0_i32_1 = arith.constant 0 : i32
    return %c0_i32, %c0_i32_0 : i32, i32
  }
  func.func @transform_2(%arg0: i32, %arg1: i32) -> (i32, i32) {
    %c0_i32 = arith.constant 0 : i32
    %c0_i32_0 = arith.constant 0 : i32
    %c0_i32_1 = arith.constant 0 : i32
    return %c0_i32, %c0_i32_0 : i32, i32
  }
  func.func @transform_3(%arg0: i32, %arg1: i32) -> (i32, i32, i32) {
    %c0_i32 = arith.constant 0 : i32
    %c0_i32_0 = arith.constant 0 : i32
    return %arg0, %arg1, %c0_i32 : i32, i32, i32
  }
}

</mosaic_0001>

<bundles_post_ra>
// kernel: tpu_custom_call.1
= control target key start
LH: loop header
LB: loop body
LE: loop exit
PB: predicated region body
PF: predicated region fallthrough
CT: control target
= control target key end

     0   :  { %s1200_s12 = smov 0   ;;  %s1202_s13 = smov 0   ;;  %s1610_s0 = inlined_call_operand.vmem [shape: bf16[2,18,18,4], index: 0, kind: input, shape index: {}]   ;;  %s1611_s1 = inlined_call_operand.vmem [shape: bf16[36,8], index: 1, kind: input, shape index: {}]   ;;  %s1612_s2 = inlined_call_operand.vmem [shape: f32[1,8], index: 2, kind: input, shape index: {}]   ;;  %s1613_s3 = inlined_call_operand.vmem [shape: f32[2,256,8], index: 3, kind: output, shape index: {}]  }
   0x1   :  { %s1204_s14 = smov 0   ;;  %s1206_s15 = smov 0  }
   0x2   :  { %s1208_s16 = smov 0  }
   0x3 LB: > { %s22_s17 = sadd.s32 1, %s1162_s14  ;;  %s25_s18 = sadd.s32 1, %s1166_s15  ;;  %s1170_s16 = sphi %s1208_s16, %s13_s16   ;;  %s1166_s15 = sphi %s1206_s15, %s1617_s15   ;;  %s1162_s14 = sphi %s1204_s14, %s1616_s14   ;;  %s1158_s13 = sphi %s1202_s13, %s1615_s13   ;;  %s1154_s12 = sphi %s1200_s12, %s1614_s12  }
   0x4   : > { %p23_p0 = scmp.ge.s32.totalorder %s22_s17, 2  ;;  %p976_p1 = scmp.ge.s32.totalorder %s1170_s16, 1 }
   0x5   : > { %p151_p2 = scmp.lt.s32.totalorder %s1170_s16, 5 }
   0x6   : > { %s1619_s17 = smov (%p23_p0, %s22_s17), 0  ;;  %s1621_s18 = smov (!%p23_p0, %s25_s18), %s1166_s15 }
   0x7   : > { %p152_p3 = pnand %p976_p1, %p151_p2  ;;  %p27_p4 = scmp.ge.s32.totalorder %s1621_s18, 2 }
   0x8   : > { %p179_p5 = scmp.lt.s32.totalorder (!%p152_p3), %s1158_s13, 1  ;;  %s1018_s19 = smul.u32 (!%p152_p3), 96, %s1154_s12  ;;  %vm406_vm0 = vcmask (!%p152_p3), 1046528   ;;  %vm293_vm1 = vsmask.f32 (!%p152_p3), 7424  ;;  %vm769_vm2 = vcmask (!%p152_p3), 1041408  }
   0x9   : > { %s1623_s18 = smov (%p27_p4, %s1621_s18), 0  ;;  %155 = sbr.rel (%p152_p3) target bundleno = 481 (0x1e1), region = 32 }
   0xa   : > { %s1172_s25 = smov (!%p152_p3), 12   ;;  %s1173_s26 = smov (!%p152_p3), 8   ;;  %vm589_vm3 = vcmask (!%p152_p3), 31744   ;;  %vm606_vm4 = vcmask (!%p152_p3), 64512   ;;  %vm640_vm5 = vcmask (!%p152_p3), 130048   ;;  %vm623_vm6 = vcmask (!%p152_p3), 97280  }
   0xb   : > { %s1174_s27 = smov (!%p152_p3), 4   ;;  %s1175_s28 = smov (!%p152_p3), 16   ;;  %vm657_vm7 = vcmask (!%p152_p3), 162816   ;;  %vm674_vm8 = vcmask (!%p152_p3), 195584   ;;  %vm691_vm9 = vcmask (!%p152_p3), 228352   ;;  %vm708_vm10 = vcmask (!%p152_p3), 261120  }
   0xc   : > { %s1176_s29 = smov (!%p152_p3), 20   ;;  %s1177_s30 = smov (!%p152_p3), 24   ;;  %vm752_vm11 = vcmask (!%p152_p3), 293888  }
   0xd   : > { %s1178_s8 = smov (!%p152_p3), 28   ;;  %s1179_s11 = smov (!%p152_p3), 32  }
  0x10   : > { %s1625_s13 = smov (!%p179_p5, %s1158_s13), 1 }
  0x11   : > { %s1060_s20 = smul.u32 216, %s1625_s13 }
  0x13   : > { %s183_s23 = scalar_lea.vmem %s1610_s0, %s1060_s20  ;;  %s979_s20 = sshll.u32 %s1625_s13, 5 }
  0x14   : > { %s1239_s24 = scalar_lea.vmem %s183_s23, %s1018_s19  ;;  %s978_s19 = sshll.u32 %s1154_s12, 4 }
  0x15   : > { %v1242_v0 = vld [vmem:[%s1239_s24 + $0x3c] sm:$0xff]   ;;  %v1245_v1 = vld [vmem:[%s1239_s24 + $0xc] sm:$0xff]   ;;  %v1112_v3 = vld [vmem:[%s1239_s24 + $0x38] ss:$0 sps:$4 sm:$0x11]   ;;  %p187_p6 = scmp.lt.s32.totalorder %s978_s19, 31 }
  0x16   : > { %460 = vrot.lane.b32.xlu1 %v1242_v0, %s1172_s25  ;;  %452 = vrot.lane.b32.xlu0 %v1245_v1, %s1172_s25  ;;  %v1252_v2 = vld [vmem:[%s1239_s24 + $0x30] sm:$0xff]   ;;  %v1256_v4 = vld [vmem:[%s1239_s24] sm:$0xff]   ;;  %v422_v5 = vrot.slane %v1242_v0, 1  ;;  %v420_v7 = vrot.slane %v1112_v3, 1  ;;  %v410_v9 = vrot.slane %v1245_v1, 1  ;;  %v307_v16 = vshrl.u32 %v1245_v1, 16 }
  0x17   : > { %v419_v6 = vrot.slane %v1252_v2, 1  ;;  %v1114_v8 = vld [vmem:[%s1239_s24 + $0x8] ss:$0 sps:$4 sm:$0x11]   ;;  %v407_v10 = vrot.slane %v1256_v4, 1  ;;  %v309_v17 = vshll.u32 %v1245_v1, 16 }
  0x18   : > { %v1115_v11 = vld [vmem:[%s1239_s24 + $0x44] ss:$0 sps:$4 sm:$0x11]   ;;  %v408_v13 = vrot.slane %v1114_v8, 1  ;;  %v295_v18 = vshrl.u32 %v1256_v4, 16  ;;  %v297_v22 = vshll.u32 %v1256_v4, 16 }
  0x19   : > { %v1265_v12 = vsel %vm406_vm0, %v419_v6, %v420_v7  ;;  %v1116_v14 = vld [vmem:[%s1239_s24 + $0x14] ss:$0 sps:$4 sm:$0x11]   ;;  %v423_v15 = vrot.slane %v1115_v11, 1  ;;  %v311_v24 = vrot.slane %v309_v17, 1  ;;  %v302_v25 = vshll.u32 %v1114_v8, 16 }
  0x1a   : > { %439 = vrot.lane.b32.xlu1 %v1265_v12, %s1173_s26  ;;  %v409_v19 = vsel %vm406_vm0, %v407_v10, %v408_v13  ;;  %v411_v20 = vrot.slane %v1116_v14, 1  ;;  %v314_v21 = vshll.u32 %v1116_v14, 16  ;;  %v355_v26 = vshrl.u32 %v1242_v0, 16  ;;  %v1289_v39 = vld [vmem:[%s1239_s24 + $0x48] sm:$0xff]   ;;  %v1296_v46 = vld [vmem:[%s1239_s24 + $0x18] sm:$0xff]   ;;  %v1314_v57 = vld [vmem:[%s1239_s24 + $0x60] sm:$0xff]  }
  0x1b   : > { %431 = vrot.lane.b32.xlu0 %v409_v19, %s1173_s26  ;;  %v1277_v23 = vsel %vm406_vm0, %v422_v5, %v423_v15  ;;  %v299_v29 = vrot.slane %v297_v22, 1  ;;  %v357_v30 = vshll.u32 %v1242_v0, 16  ;;  %v312_v31 = vor.u32 %v311_v24, %v307_v16  ;;  %v1119_v47 = vld [vmem:[%s1239_s24 + $0x50] ss:$0 sps:$4 sm:$0x11]   ;;  %s1627_s19 = smov (!%p187_p6, %s978_s19), 31 }
  0x1c   : > { %v1281_v27 = vsel %vm406_vm0, %v410_v9, %v411_v20  ;;  %v316_v28 = vrot.slane %v314_v21, 1  ;;  %v304_v32 = vrot.slane %v302_v25, 1  ;;  %v362_v33 = vshll.u32 %v1115_v11, 16  ;;  %v1120_v51 = vld [vmem:[%s1239_s24 + $0x20] ss:$0 sps:$4 sm:$0x11]   ;;  %s190_s21 = sadd.s32 %s979_s20, %s1627_s19 }
  0x1d   : > { %v343_v34 = vshrl.u32 %v1252_v2, 16  ;;  %v300_v35 = vor.u32 %v299_v29, %v295_v18  ;;  %v359_v36 = vrot.slane %v357_v30, 1  ;;  %v345_v37 = vshll.u32 %v1252_v2, 16  ;;  %v1322_v61 = vld [vmem:[%s1239_s24 + $0x6c] sm:$0xff]   ;;  %s980_s22 = sshll.u32 %s190_s21, 3 }
  0x1e   : > { %441 = vrot.lane.b32.xlu1 %v1277_v23, %s1173_s26  ;;  %v350_v38 = vshll.u32 %v1112_v3, 16  ;;  %v317_v40 = vsel %vm293_vm1, %v312_v31, %v316_v28  ;;  %v364_v41 = vrot.slane %v362_v33, 1  ;;  %v369_v50 = vshll.u32 %v1289_v39, 16  ;;  %v1126_v3 = vld [vmem:[%s1239_s24 + $0x68] ss:$0 sps:$4 sm:$0x11]  }
  0x1f   : > { %433 = vrot.lane.b32.xlu0 %v1281_v27, %s1173_s26  ;;  %v305_v42 = vsel %vm293_vm1, %v300_v35, %v304_v32  ;;  %v360_v43 = vor.u32 %v359_v36, %v355_v26  ;;  %v347_v44 = vrot.slane %v345_v37, 1  ;;  %v321_v53 = vshll.u32 %v1296_v46, 16  ;;  %v1128_v15 = vld [vmem:[%s1239_s24 + $0x74] ss:$0 sps:$4 sm:$0x11]  }
  0x20   : > { %v352_v45 = vrot.slane %v350_v38, 1  ;;  %v367_v54 = vshrl.u32 %v1289_v39, 16  ;;  %v371_v55 = vrot.slane %v369_v50, 1  ;;  %v374_v56 = vshll.u32 %v1119_v47, 16  ;;  %v1367_v38 = vld [vmem:[%s1239_s24 + $0x54] sm:$0xff]  }
  0x21   : > { %v1301_v48 = vsel %vm293_vm1, %v360_v43, %v364_v41  ;;  %v348_v49 = vor.u32 %v347_v44, %v343_v34  ;;  %v326_v58 = vshll.u32 %v1120_v51, 16  ;;  %v319_v59 = vshrl.u32 %v1296_v46, 16  ;;  %v1373_v41 = vld [vmem:[%s1239_s24 + $0x24] sm:$0xff]   ;;  %v1124_v44 = vld [vmem:[%s1239_s24 + $0x2c] ss:$0 sps:$4 sm:$0x11]  }
  0x22   : > { %392 = vrot.lane.b32.xlu1 %v317_v40, %s1174_s27  ;;  %v323_v60 = vrot.slane %v321_v53, 1  ;;  %v372_v62 = vor.u32 %v371_v55, %v367_v54  ;;  %v376_v63 = vrot.slane %v374_v56, 1  ;;  %v472_v5 = vshrl.u32 %v1314_v57, 16  ;;  %v1130_v55 = vld [vmem:[%s1611_s1 + $0x8] sm:$0xff]  }
  0x23   : > { %390 = vrot.lane.b32.xlu0 %v305_v42, %s1174_s27  ;;  %v1307_v52 = vsel %vm293_vm1, %v348_v49, %v352_v45  ;;  %v474_v6 = vshll.u32 %v1314_v57, 16  ;;  %v328_v7 = vrot.slane %v326_v58, 1  ;;  %v499_v8 = vrot.slane %v1314_v57, 1  ;;  %v1123_v42 = vld [vmem:[%s1239_s24 + $0x5c] ss:$0 sps:$4 sm:$0x11]  }
  0x24   : > { %v324_v9 = vor.u32 %v323_v60, %v319_v59  ;;  %v479_v11 = vshll.u32 %v1126_v3, 16  ;;  %v543_v13 = vshrl.u32 %v1322_v61, 16  ;;  %v500_v14 = vrot.slane %v1126_v3, 1 }
  0x25   : > { %v476_v10 = vrot.slane %v474_v6, 1  ;;  %v545_v16 = vshll.u32 %v1322_v61, 16  ;;  %v570_v17 = vrot.slane %v1322_v61, 1  ;;  %v1337_v18 = vsel %vm293_vm1, %v372_v62, %v376_v63  ;;  %v1131_v62 = vld [vmem:[%s1611_s1 + $0x10] ss:$0 sps:$4 sm:$0x33]  }
  0x26   : > { %400 = vrot.lane.b32.xlu1 %v1301_v48, %s1174_s27  ;;  %v481_v20 = vrot.slane %v479_v11, 1  ;;  %v1341_v21 = vsel %vm406_vm0, %v499_v8, %v500_v14  ;;  %v550_v24 = vshll.u32 %v1128_v15, 16  ;;  %v571_v25 = vrot.slane %v1128_v15, 1 }
  0x27   : > { %398 = vrot.lane.b32.xlu0 %v1307_v52, %s1174_s27  ;;  %v477_v19 = vor.u32 %v476_v10, %v472_v5  ;;  %v547_v22 = vrot.slane %v545_v16, 1  ;;  %v1344_v26 = vsel %vm293_vm1, %v324_v9, %v328_v7  ;;  %v425_v32 = vrot.slane %v1289_v39, 1 }
  0x28   : > { %v552_v30 = vrot.slane %v550_v24, 1  ;;  %v1352_v31 = vsel %vm406_vm0, %v570_v17, %v571_v25  ;;  %v426_v33 = vrot.slane %v1119_v47, 1  ;;  %v413_v35 = vrot.slane %v1296_v46, 1 }
  0x29   : > { %v1347_v28 = vsel %vm293_vm1, %v477_v19, %v481_v20  ;;  %v548_v29 = vor.u32 %v547_v22, %v543_v13  ;;  %v414_v36 = vrot.slane %v1120_v51, 1  ;;  %v381_v43 = vshll.u32 %v1367_v38, 16 }
  0x2a   : > { %462 = vrot.lane.b32.xlu1 %v1289_v39, %s1172_s25  ;;  %v1364_v37 = vsel %vm406_vm0, %v425_v32, %v426_v33  ;;  %v333_v45 = vshll.u32 %v1373_v41, 16  ;;  %v379_v47 = vshrl.u32 %v1367_v38, 16  ;;  %v386_v50 = vshll.u32 %v1123_v42, 16 }
  0x2b   : > { %454 = vrot.lane.b32.xlu0 %v1296_v46, %s1172_s25  ;;  %v1358_v34 = vsel %vm293_vm1, %v548_v29, %v552_v30  ;;  %v383_v49 = vrot.slane %v381_v43, 1  ;;  %v331_v51 = vshrl.u32 %v1373_v41, 16  ;;  %v338_v54 = vshll.u32 %v1124_v44, 16 }
  0x2c   : > { %v335_v53 = vrot.slane %v333_v45, 1  ;;  %v388_v58 = vrot.slane %v386_v50, 1  ;;  %v771_v3 = vsel %vm769_vm2, %v1131_v62, 0  ;;  %v428_v6 = vrot.slane %v1367_v38, 1 }
  0x2d   : > { %v384_v56 = vor.u32 %v383_v49, %v379_v47  ;;  %v340_v60 = vrot.slane %v338_v54, 1  ;;  %v429_v7 = vrot.slane %v1123_v42, 1  ;;  %v416_v8 = vrot.slane %v1373_v41, 1 }
  0x2e   : > { %491 = vrot.lane.b32.xlu1 %v1301_v48, %s1175_s28  ;;  %v336_v59 = vor.u32 %v335_v53, %v331_v51  ;;  %v417_v9 = vrot.slane %v1124_v44, 1 }
  0x2f   : > { %483 = vrot.lane.b32.xlu0 %v317_v40, %s1175_s28  ;;  %v415_v40 = vsel %vm406_vm0, %v413_v35, %v414_v36  ;;  %v389_v63 = vsel %vm293_vm1, %v384_v56, %v388_v58  ;;  %v430_v10 = vsel %vm406_vm0, %v428_v6, %v429_v7 }
  0x30   : > { %v341_v5 = vsel %vm293_vm1, %v336_v59, %v340_v60  ;;  %v418_v11 = vsel %vm406_vm0, %v416_v8, %v417_v9 }
  0x32   : > { %493 = vrot.lane.b32.xlu1 %v1337_v18, %s1175_s28 }
  0x33   : > { %485 = vrot.lane.b32.xlu0 %v1344_v26, %s1175_s28 }
  0x36   : > { %510 = vrot.lane.b32.xlu1 %v1277_v23, %s1176_s29 }
  0x37   : > { %502 = vrot.lane.b32.xlu0 %v1281_v27, %s1176_s29  ;;  %v1129_v27 = vld [vmem:[%s1611_s1] sm:$0xff]  }
  0x38   : > { %1030 = vmatprep.subr.bf16.mxu0 %v1129_v27  ;;  %1052 = vmatprep.subr.bf16.mxu1 %v1129_v27 }
  0x39   : > { %1031 = vmatpush3.bf16.msra.mxu0 %v1129_v27  ;;  %1055 = vmatpush3.bf16.msra.mxu1 %v1129_v27 }
  0x3a   : > { %512 = vrot.lane.b32.xlu1 %v1364_v37, %s1176_s29  ;;  %1032 = vmatprep.subr.bf16.mxu0 %v1130_v55 }
  0x3b   : > { %504 = vrot.lane.b32.xlu0 %v415_v40, %s1176_s29  ;;  %1053 = vmatprep.subr.bf16.mxu1 %v1130_v55 }
  0x3d   : > { %1033 = vmatpush3.bf16.msra.mxu0 %v1130_v55  ;;  %1056 = vmatpush3.bf16.msra.mxu1 %v1130_v55 }
  0x3e   : > { %531 = vrot.lane.b32.xlu1 %v1289_v39, %s1177_s30  ;;  %1058 = vmatprep.subr.msk.bf16.mxu0 %vm769_vm2, %v1131_v62 }
  0x3f   : > { %523 = vrot.lane.b32.xlu0 %v1296_v46, %s1177_s30  ;;  %1059 = vmatprep.subr.msk.bf16.mxu1 %vm769_vm2, %v1131_v62 }
  0x41   : > { %1035 = vmatpush3.bf16.msra.mxu0 %v771_v3  ;;  %1057 = vmatpush3.bf16.msra.mxu1 %v771_v3 }
  0x42   : > { %533 = vrot.lane.b32.xlu1 %v1367_v38, %s1177_s30 }
  0x43   : > { %525 = vrot.lane.b32.xlu0 %v1373_v41, %s1177_s30 }
  0x46   : > { %562 = vrot.lane.b32.xlu1 %v1337_v18, %s1178_s8 }
  0x47   : > { %554 = vrot.lane.b32.xlu0 %v1344_v26, %s1178_s8 }
  0x4a   : > { %564 = vrot.lane.b32.xlu1 %v389_v63, %s1178_s8 }
  0x4b   : > { %556 = vrot.lane.b32.xlu0 %v341_v5, %s1178_s8 }
  0x4e   : > { %581 = vrot.lane.b32.xlu1 %v1364_v37, %s1179_s11 }
  0x4f   : > { %573 = vrot.lane.b32.xlu0 %v415_v40, %s1179_s11 }
  0x52   : > { %402 = vrot.lane.b32.xlu1 %v1337_v18, %s1174_s27 }
  0x53   : > { %394 = vrot.lane.b32.xlu0 %v1344_v26, %s1174_s27 }
  0x56   : > { %583 = vrot.lane.b32.xlu1 %v430_v10, %s1179_s11 }
  0x57   : > { %575 = vrot.lane.b32.xlu0 %v418_v11, %s1179_s11 }
  0x5a   : > { %404 = vrot.lane.b32.xlu1 %v389_v63, %s1174_s27 }
  0x5b   : > { %396 = vrot.lane.b32.xlu0 %v341_v5, %s1174_s27  ;;  %s1561_s27 = scalar_lea.vmem %s1613_s3, %s980_s22 }
  0x5e   : > { %443 = vrot.lane.b32.xlu1 %v1364_v37, %s1173_s26 }
  0x5f   : > { %435 = vrot.lane.b32.xlu0 %v415_v40, %s1173_s26 }
  0x62   : > { %445 = vrot.lane.b32.xlu1 %v430_v10, %s1173_s26 }
  0x63   : > { %437 = vrot.lane.b32.xlu0 %v418_v11, %s1173_s26 }
  0x66   : > { %464 = vrot.lane.b32.xlu1 %v1367_v38, %s1172_s25 }
  0x67   : > { %456 = vrot.lane.b32.xlu0 %v1373_v41, %s1172_s25 }
  0x6a   : > { %466 = vrot.lane.b32.xlu1 %v1314_v57, %s1172_s25 }
  0x6b   : > { %458 = vrot.lane.b32.xlu0 %v1252_v2, %s1172_s25 }
  0x6e   : > { %495 = vrot.lane.b32.xlu1 %v389_v63, %s1175_s28 }
  0x6f   : > { %487 = vrot.lane.b32.xlu0 %v341_v5, %s1175_s28 }
  0x72   : > { %497 = vrot.lane.b32.xlu1 %v1347_v28, %s1175_s28 }
  0x73   : > { %489 = vrot.lane.b32.xlu0 %v1307_v52, %s1175_s28 }
  0x76   : > { %514 = vrot.lane.b32.xlu1 %v430_v10, %s1176_s29 }
  0x77   : > { %506 = vrot.lane.b32.xlu0 %v418_v11, %s1176_s29 }
  0x7a   : > { %516 = vrot.lane.b32.xlu1 %v1341_v21, %s1176_s29 }
  0x7b   : > { %508 = vrot.lane.b32.xlu0 %v1265_v12, %s1176_s29 }
  0x7e   : > { %535 = vrot.lane.b32.xlu1 %v1314_v57, %s1177_s30 }
  0x7f   : > { %527 = vrot.lane.b32.xlu0 %v1252_v2, %s1177_s30 }
  0x82   : > { %537 = vrot.lane.b32.xlu1 %v1322_v61, %s1177_s30 }
  0x83   : > { %529 = vrot.lane.b32.xlu0 %v1242_v0, %s1177_s30 }
  0x86   : > { %566 = vrot.lane.b32.xlu1 %v1347_v28, %s1178_s8 }
  0x87   : > { %558 = vrot.lane.b32.xlu0 %v1307_v52, %s1178_s8 }
  0x88   : > { %v461_v13 = vpop.permute.xlu1 %460  ;;  %v453_v14 = vpop.permute.xlu0 %452 }
  0x8a   : > { %568 = vrot.lane.b32.xlu1 %v1358_v34, %s1178_s8 }
  0x8b   : > { %560 = vrot.lane.b32.xlu0 %v1301_v48, %s1178_s8 }
  0x8c   : > { %v440_v57 = vpop.permute.xlu1 %439 }
  0x8d   : > { %v432_v15 = vpop.permute.xlu0 %431 }
  0x8e   : > { %585 = vrot.lane.b32.xlu1 %v1341_v21, %s1179_s11 }
  0x8f   : > { %577 = vrot.lane.b32.xlu0 %v1265_v12, %s1179_s11 }
  0x90   : > { %v442_v61 = vpop.permute.xlu1 %441 }
  0x91   : > { %v434_v16 = vpop.permute.xlu0 %433 }
  0x92   : > { %587 = vrot.lane.b32.xlu1 %v1352_v31, %s1179_s11 }
  0x93   : > { %579 = vrot.lane.b32.xlu0 %v1277_v23, %s1179_s11 }
  0x94   : > { %v393_v52 = vpop.permute.xlu1 %392 }
  0x95   : > { %v391_v17 = vpop.permute.xlu0 %390  ;;  %v593_v56 = vsel %vm589_vm3, %v1245_v1, %v393_v52 }
  0x96   : > { %v591_v34 = vsel %vm589_vm3, %v1256_v4, %v391_v17  ;;  %v610_v3 = vsel %vm606_vm4, %v593_v56, %v434_v16 }
  0x97   : > { %v608_v40 = vsel %vm606_vm4, %v591_v34, %v432_v15 }
  0x98   : > { %v401_v18 = vpop.permute.xlu1 %400  ;;  %v625_v44 = vsel %vm623_vm6, %v608_v40, %v453_v14 }
  0x99   : > { %v399_v48 = vpop.permute.xlu0 %398  ;;  %v601_v49 = vsel %vm589_vm3, %v1242_v0, %v401_v18 }
  0x9a   : > { %v599_v23 = vsel %vm589_vm3, %v1252_v2, %v399_v48  ;;  %v618_v60 = vsel %vm606_vm4, %v601_v49, %v442_v61 }
  0x9b   : > { %v616_v36 = vsel %vm606_vm4, %v599_v23, %v440_v57 }
  0x9c   : > { %v463_v19 = vpop.permute.xlu1 %462  ;;  %v633_v42 = vsel %vm623_vm6, %v616_v36, %v461_v13 }
  0x9d   : > { %v455_v20 = vpop.permute.xlu0 %454  ;;  %v635_v62 = vsel %vm623_vm6, %v618_v60, %v463_v19 }
  0x9e   : > { %v627_v1 = vsel %vm623_vm6, %v610_v3, %v455_v20 }
  0xa0   : > { %v492_v22 = vpop.permute.xlu1 %491 }
  0xa1   : > { %v484_v24 = vpop.permute.xlu0 %483  ;;  %v650_v2 = vsel %vm640_vm5, %v633_v42, %v492_v22 }
  0xa2   : > { %v642_v27 = vsel %vm640_vm5, %v625_v44, %v484_v24 }
  0xa4   : > { %v494_v21 = vpop.permute.xlu1 %493 }
  0xa5   : > { %v486_v25 = vpop.permute.xlu0 %485  ;;  %v652_v5 = vsel %vm640_vm5, %v635_v62, %v494_v21 }
  0xa6   : > { %v644_v8 = vsel %vm640_vm5, %v627_v1, %v486_v25 }
  0xa8   : > { %v511_v26 = vpop.permute.xlu1 %510 }
  0xa9   : > { %v503_v12 = vpop.permute.xlu0 %502  ;;  %v667_v4 = vsel %vm657_vm7, %v650_v2, %v511_v26 }
  0xaa   : > { %v659_v50 = vsel %vm657_vm7, %v642_v27, %v503_v12 }
  0xac   : > { %v513_v28 = vpop.permute.xlu1 %512 }
  0xad   : > { %v505_v29 = vpop.permute.xlu0 %504  ;;  %v669_v6 = vsel %vm657_vm7, %v652_v5, %v513_v28 }
  0xae   : > { %v661_v10 = vsel %vm657_vm7, %v644_v8, %v505_v29 }
  0xb0   : > { %v532_v30 = vpop.permute.xlu1 %531 }
  0xb1   : > { %v524_v32 = vpop.permute.xlu0 %523  ;;  %v684_v47 = vsel %vm674_vm8, %v667_v4, %v532_v30 }
  0xb2   : > { %v676_v54 = vsel %vm674_vm8, %v659_v50, %v524_v32 }
  0xb4   : > { %v534_v31 = vpop.permute.xlu1 %533 }
  0xb5   : > { %v526_v33 = vpop.permute.xlu0 %525  ;;  %v686_v9 = vsel %vm674_vm8, %v669_v6, %v534_v31 }
  0xb6   : > { %v678_v14 = vsel %vm674_vm8, %v661_v10, %v526_v33 }
  0xb8   : > { %v563_v35 = vpop.permute.xlu1 %562 }
  0xb9   : > { %v555_v37 = vpop.permute.xlu0 %554  ;;  %v701_v51 = vsel %vm691_vm9, %v684_v47, %v563_v35 }
  0xba   : > { %v693_v58 = vsel %vm691_vm9, %v676_v54, %v555_v37 }
  0xbc   : > { %v565_v43 = vpop.permute.xlu1 %564 }
  0xbd   : > { %v557_v45 = vpop.permute.xlu0 %556  ;;  %v703_v11 = vsel %vm691_vm9, %v686_v9, %v565_v43 }
  0xbe   : > { %v695_v15 = vsel %vm691_vm9, %v678_v14, %v557_v45 }
  0xc0   : > { %v582_v53 = vpop.permute.xlu1 %581 }
  0xc1   : > { %v718_v55 = vsel %vm708_vm10, %v701_v51, %v582_v53  ;;  %v574_v59 = vpop.permute.xlu0 %573 }
  0xc2   : > { %1044 = vmatprep.mubr.msk.bf16.mxu1 %vm752_vm11, %v718_v55  ;;  %v710_v0 = vsel %vm708_vm10, %v693_v58, %v574_v59 }
  0xc3   : > { %1036 = vmatprep.mubr.msk.bf16.mxu0 %vm752_vm11, %v710_v0 }
  0xc4   : > { %v403_v63 = vpop.permute.xlu1 %402 }
  0xc5   : > { %v395_v7 = vpop.permute.xlu0 %394  ;;  %v603_v40 = vsel %vm589_vm3, %v1289_v39, %v403_v63 }
  0xc6   : > { %v595_v2 = vsel %vm589_vm3, %v1296_v46, %v395_v7 }
  0xc8   : > { %v584_v13 = vpop.permute.xlu1 %583 }
  0xc9   : > { %v720_v57 = vsel %vm708_vm10, %v703_v11, %v584_v13  ;;  %v576_v61 = vpop.permute.xlu0 %575 }
  0xca   : > { %1045 = vmatmul.mubr.msk.bf16.vlgmr.msra.gmra.mrb[0].mxu1 %vm752_vm11, %v720_v57  ;;  %v712_v16 = vsel %vm708_vm10, %v695_v15, %v576_v61  ;;  %v1004_v61 = vld [vmem:[%s1612_s2] ss:$0 sm:$0xff] }
  0xcb   : > { %1037 = vmatmul.mubr.msk.bf16.vlgmr.msra.gmra.mrb[0].mxu0 %vm752_vm11, %v712_v16 }
  0xcc   : > { %v405_v52 = vpop.permute.xlu1 %404 }
  0xcd   : > { %v397_v17 = vpop.permute.xlu0 %396  ;;  %v605_v47 = vsel %vm589_vm3, %v1367_v38, %v405_v52 }
  0xce   : > { %v597_v54 = vsel %vm589_vm3, %v1373_v41, %v397_v17 }
  0xd0   : > { %v444_v18 = vpop.permute.xlu1 %443 }
  0xd1   : > { %v436_v48 = vpop.permute.xlu0 %435  ;;  %v620_v43 = vsel %vm606_vm4, %v603_v40, %v444_v18 }
  0xd2   : > { %v612_v45 = vsel %vm606_vm4, %v595_v2, %v436_v48 }
  0xd4   : > { %v446_v19 = vpop.permute.xlu1 %445 }
  0xd5   : > { %v438_v20 = vpop.permute.xlu0 %437  ;;  %v622_v51 = vsel %vm606_vm4, %v605_v47, %v446_v19 }
  0xd6   : > { %v614_v59 = vsel %vm606_vm4, %v597_v54, %v438_v20 }
  0xd8   : > { %v465_v22 = vpop.permute.xlu1 %464 }
  0xd9   : > { %v457_v24 = vpop.permute.xlu0 %456  ;;  %v637_v44 = vsel %vm623_vm6, %v620_v43, %v465_v22 }
  0xda   : > { %v629_v49 = vsel %vm623_vm6, %v612_v45, %v457_v24 }
  0xdc   : > { %v467_v21 = vpop.permute.xlu1 %466 }
  0xdd   : > { %v459_v25 = vpop.permute.xlu0 %458  ;;  %v639_v55 = vsel %vm623_vm6, %v622_v51, %v467_v21 }
  0xde   : > { %v631_v63 = vsel %vm623_vm6, %v614_v59, %v459_v25 }
  0xe0   : > { %v496_v26 = vpop.permute.xlu1 %495 }
  0xe1   : > { %v488_v12 = vpop.permute.xlu0 %487  ;;  %v654_v27 = vsel %vm640_vm5, %v637_v44, %v496_v26 }
  0xe2   : > { %v646_v53 = vsel %vm640_vm5, %v629_v49, %v488_v12 }
  0xe4   : > { %v498_v28 = vpop.permute.xlu1 %497 }
  0xe5   : > { %v490_v29 = vpop.permute.xlu0 %489  ;;  %v656_v60 = vsel %vm640_vm5, %v639_v55, %v498_v28 }
  0xe6   : > { %v648_v1 = vsel %vm640_vm5, %v631_v63, %v490_v29 }
  0xe8   : > { %v515_v30 = vpop.permute.xlu1 %514 }
  0xe9   : > { %v507_v32 = vpop.permute.xlu0 %506  ;;  %v671_v39 = vsel %vm657_vm7, %v654_v27, %v515_v30 }
  0xea   : > { %v663_v56 = vsel %vm657_vm7, %v646_v53, %v507_v32 }
  0xec   : > { %v517_v31 = vpop.permute.xlu1 %516 }
  0xed   : > { %v509_v23 = vpop.permute.xlu0 %508  ;;  %v673_v3 = vsel %vm657_vm7, %v656_v60, %v517_v31 }
  0xee   : > { %v665_v8 = vsel %vm657_vm7, %v648_v1, %v509_v23 }
  0xf0   : > { %v536_v33 = vpop.permute.xlu1 %535 }
  0xf1   : > { %v528_v34 = vpop.permute.xlu0 %527  ;;  %v688_v46 = vsel %vm674_vm8, %v671_v39, %v536_v33 }
  0xf2   : > { %v680_v0 = vsel %vm674_vm8, %v663_v56, %v528_v34 }
  0xf4   : > { %v538_v35 = vpop.permute.xlu1 %537 }
  0xf5   : > { %v530_v36 = vpop.permute.xlu0 %529  ;;  %v690_v6 = vsel %vm674_vm8, %v673_v3, %v538_v35 }
  0xf6   : > { %v682_v11 = vsel %vm674_vm8, %v665_v8, %v530_v36 }
  0xf8   : > { %v567_v37 = vpop.permute.xlu1 %566 }
  0xf9   : > { %v559_v42 = vpop.permute.xlu0 %558  ;;  %v705_v38 = vsel %vm691_vm9, %v688_v46, %v567_v37 }
  0xfa   : > { %v697_v41 = vsel %vm691_vm9, %v680_v0, %v559_v42 }
  0xfc   : > { %v569_v4 = vpop.permute.xlu1 %568 }
  0xfd   : > { %v561_v50 = vpop.permute.xlu0 %560  ;;  %v707_v9 = vsel %vm691_vm9, %v690_v6, %v569_v4 }
  0xfe   : > { %v699_v14 = vsel %vm691_vm9, %v682_v11, %v561_v50 }
 0x100   : > { %v586_v58 = vpop.permute.xlu1 %585 }
 0x101   : > { %v722_v62 = vsel %vm708_vm10, %v705_v38, %v586_v58  ;;  %v578_v5 = vpop.permute.xlu0 %577 }
 0x102   : > { %1048 = vmatprep.mubr.msk.bf16.mxu1 %vm752_vm11, %v722_v62  ;;  %v714_v7 = vsel %vm708_vm10, %v697_v41, %v578_v5 }
 0x103   : > { %1040 = vmatprep.mubr.msk.bf16.mxu0 %vm752_vm11, %v714_v7 }
 0x104   : > { %v588_v10 = vpop.permute.xlu1 %587 }
 0x105   : > { %v724_v13 = vsel %vm708_vm10, %v707_v9, %v588_v10  ;;  %v580_v57 = vpop.permute.xlu0 %579 }
 0x106   : > { %1049 = vmatmul.mubr.msk.bf16.gmra.mrb[4].mxu1 %vm752_vm11, %v724_v13  ;;  %v716_v15 = vsel %vm708_vm10, %v699_v14, %v580_v57 }
 0x107   : > { %1041 = vmatmul.mubr.msk.bf16.gmra.mrb[4].mxu0 %vm752_vm11, %v716_v15 }
 0x19d   : > { %v1046_v16 = vpop.f32.mrb[0].mxu1 }
 0x19e   : > { %v848_v52 = vadd.f32 %v1046_v16, %v1004_v61  ;;  %v839_v17 = vpop.f32.mrb[1].mxu1  ;;  %v1038_v18 = vpop.f32.mrb[0].mxu0 }
 0x19f   : > { %v840_v48 = vadd.f32 %v1004_v61, %v839_v17  ;;  %v1047_v19 = vpop.f32.mrb[2].mxu1  ;;  %v816_v20 = vadd.f32 %v1038_v18, %v1004_v61  ;;  %v807_v22 = vpop.f32.mrb[1].mxu0 }
 0x1a0   : > { %880 = vst.msk [vmem:[%s1561_s27 + $0x50] sm:$0xff] %vm606_vm4, %v848_v52  ;;  %v851_v24 = vadd.f32 %v1047_v19, %v1004_v61  ;;  %v842_v21 = vpop.f32.mrb[3].mxu1  ;;  %v808_v25 = vadd.f32 %v1004_v61, %v807_v22  ;;  %v1039_v26 = vpop.f32.mrb[2].mxu0 }
 0x1a1   : > { %878 = vst.msk [vmem:[%s1561_s27 + $0x40] sm:$0xff] %vm606_vm4, %v840_v48  ;;  %v843_v12 = vadd.f32 %v1004_v61, %v842_v21  ;;  %872 = vst.msk [vmem:[%s1561_s27 + $0x10] sm:$0xff] %vm606_vm4, %v816_v20  ;;  %v819_v28 = vadd.f32 %v1039_v26, %v1004_v61  ;;  %v810_v29 = vpop.f32.mrb[3].mxu0 }
 0x1a2   : > { %881 = vst.msk [vmem:[%s1561_s27 + $0x58] sm:$0xff] %vm606_vm4, %v851_v24  ;;  %870 = vst.msk [vmem:[%s1561_s27] sm:$0xff] %vm606_vm4, %v808_v25  ;;  %v811_v30 = vadd.f32 %v1004_v61, %v810_v29 }
 0x1a3   : > { %879 = vst.msk [vmem:[%s1561_s27 + $0x48] sm:$0xff] %vm606_vm4, %v843_v12  ;;  %873 = vst.msk [vmem:[%s1561_s27 + $0x18] sm:$0xff] %vm606_vm4, %v819_v28 }
 0x1a4   : > { %871 = vst.msk [vmem:[%s1561_s27 + $0x8] sm:$0xff] %vm606_vm4, %v811_v30 }
 0x1d9   : > { %v1050_v32 = vpop.f32.mrb[4].mxu1 }
 0x1da   : > { %v864_v31 = vadd.f32 %v1050_v32, %v1004_v61  ;;  %v855_v23 = vpop.f32.mrb[5].mxu1  ;;  %v1042_v33 = vpop.f32.mrb[4].mxu0 }
 0x1db   : > { %v856_v34 = vadd.f32 %v1004_v61, %v855_v23  ;;  %v1051_v35 = vpop.f32.mrb[6].mxu1  ;;  %v832_v36 = vadd.f32 %v1042_v33, %v1004_v61  ;;  %v823_v37 = vpop.f32.mrb[5].mxu0 }
 0x1dc   : > { %884 = vst.msk [vmem:[%s1561_s27 + $0x70] sm:$0xff] %vm606_vm4, %v864_v31  ;;  %v867_v40 = vadd.f32 %v1051_v35, %v1004_v61  ;;  %v858_v42 = vpop.f32.mrb[7].mxu1  ;;  %v824_v43 = vadd.f32 %v1004_v61, %v823_v37  ;;  %v1043_v2 = vpop.f32.mrb[6].mxu0 }
 0x1dd   : > { %882 = vst.msk [vmem:[%s1561_s27 + $0x60] sm:$0xff] %vm606_vm4, %v856_v34  ;;  %v859_v44 = vadd.f32 %v1004_v61, %v858_v42  ;;  %876 = vst.msk [vmem:[%s1561_s27 + $0x30] sm:$0xff] %vm606_vm4, %v832_v36  ;;  %v835_v4 = vadd.f32 %v1043_v2, %v1004_v61  ;;  %v826_v45 = vpop.f32.mrb[7].mxu0 }
 0x1de   : > { %885 = vst.msk [vmem:[%s1561_s27 + $0x78] sm:$0xff] %vm606_vm4, %v867_v40  ;;  %874 = vst.msk [vmem:[%s1561_s27 + $0x20] sm:$0xff] %vm606_vm4, %v824_v43  ;;  %v827_v27 = vadd.f32 %v1004_v61, %v826_v45 }
 0x1df   : > { %883 = vst.msk [vmem:[%s1561_s27 + $0x68] sm:$0xff] %vm606_vm4, %v859_v44  ;;  %877 = vst.msk [vmem:[%s1561_s27 + $0x38] sm:$0xff] %vm606_vm4, %v835_v4 }
 0x1e0   : > { %875 = vst.msk [vmem:[%s1561_s27 + $0x28] sm:$0xff] %vm606_vm4, %v827_v27 }
 0x1e1 PF: > { %s13_s16 = sadd.s32 1, %s1170_s16   ;;  %s1614_s12 = smov %s1162_s14 }
 0x1e2   : > { %p10_p7 = scmp.ge.s32.totalorder %s13_s16, 6   ;;  %s1615_s13 = smov %s1166_s15 }
 0x1e3   : > { %s1616_s14 = smov %s1619_s17  ;;  %s1617_s15 = smov %s1623_s18 }
 0x1e4   :  { %12 = sbr.rel (!%p10_p7) target bundleno = 3 (0x3), region = 63 }

</bundles_post_ra>
